<compile_context>
chip_gen: v7x
topology: tpu7x:2x2x1
jax: 0.10.0
libtpu: 0.0.40
codegen_flags: <defaults>
</compile_context>

<pallas_src>
import functools
import math

import jax
import jax.numpy as jnp
from jax.experimental import pallas as pl
from jax.experimental.pallas import tpu as pltpu


_VMEM_LIMIT_BYTES = 48 * 1024 * 1024      # safe on v5e/v6e (128 MiB) and v7x (64 MiB)
_FUSED_STEP_SLAB_BYTES = 8 * 1024 * 1024  # per-grid-step input slab (vis+sk) budget
_TILED_BLOCK_BYTES = 4 * 1024 * 1024      # fallback per-block target


def _round_up(x, m):
    return (x + m - 1) // m * m


def _ceil_div(a, b):
    return -(-a // b)


# ----------------------------------------------------------------------------
# Fused path: one pallas_call, batch-tiled ("parallel" grid -> v7x megacore)
# ----------------------------------------------------------------------------
def _fused_kernel(vis_ref, sk_ref, wsqv_ref, wsqs_ref, bsq_ref,
                  wv_ref, bv_ref, ws_ref, bs_ref,
                  out_vis_ref, out_sk_ref, vgate_ref, sgate_ref,
                  *, inv_sv, inv_ss):
    vis = vis_ref[...]                                    # (bt, Cv, Sv)
    sk = sk_ref[...]                                      # (bt, Cs, Ss)

    # squeeze: per-(b, c) spatial means, f32 accumulation
    mean_v = jnp.sum(vis.astype(jnp.float32), axis=-1) * inv_sv   # (bt, Cv)
    mean_s = jnp.sum(sk.astype(jnp.float32), axis=-1) * inv_ss    # (bt, Cs)

    # gate MLP (tiny matmuls on the MXU, computed once per batch block)
    exc = jnp.dot(mean_v, wsqv_ref[...], preferred_element_type=jnp.float32)
    exc = exc + jnp.dot(mean_s, wsqs_ref[...], preferred_element_type=jnp.float32)
    exc = jnp.maximum(exc + bsq_ref[...], 0.0)

    vg = jnp.dot(exc, wv_ref[...], preferred_element_type=jnp.float32) + bv_ref[...]
    sg = jnp.dot(exc, ws_ref[...], preferred_element_type=jnp.float32) + bs_ref[...]
    vg = 1.0 / (1.0 + jnp.exp(-vg))                       # sigmoid (EUP)
    sg = 1.0 / (1.0 + jnp.exp(-sg))

    vgate_ref[...] = vg[:, :, None]
    sgate_ref[...] = sg[:, :, None]

    # excite / rescale in the input dtype, written back once
    out_vis_ref[...] = vis * vg[:, :, None].astype(vis.dtype)
    out_sk_ref[...] = sk * sg[:, :, None].astype(sk.dtype)


def _fused_forward(vis3, sk3, params):
    B, Cv, Sv = vis3.shape
    _, Cs, Ss = sk3.shape
    itemsize = vis3.dtype.itemsize
    per_b = (Cv * Sv + Cs * Ss) * itemsize

    bt = max(1, min(B, _FUSED_STEP_SLAB_BYTES // max(per_b, 1)))
    if B >= 2:
        bt = min(bt, (B + 1) // 2)   # >=2 grid steps -> both v7x TensorCores busy
    grid_b = _ceil_div(B, bt)

    kern = functools.partial(_fused_kernel, inv_sv=1.0 / Sv, inv_ss=1.0 / Ss)

    def full_spec(shape):
        return pl.BlockSpec(shape, lambda i: (0,) * len(shape))

    out_vis, out_sk, vgate, sgate = pl.pallas_call(
        kern,
        out_shape=(jax.ShapeDtypeStruct((B, Cv, Sv), vis3.dtype),
                   jax.ShapeDtypeStruct((B, Cs, Ss), sk3.dtype),
                   jax.ShapeDtypeStruct((B, Cv, 1), jnp.float32),
                   jax.ShapeDtypeStruct((B, Cs, 1), jnp.float32)),
        grid=(grid_b,),
        in_specs=[pl.BlockSpec((bt, Cv, Sv), lambda i: (i, 0, 0)),
                  pl.BlockSpec((bt, Cs, Ss), lambda i: (i, 0, 0)),
                  full_spec(params["w_sq_v"].shape),
                  full_spec(params["w_sq_s"].shape),
                  full_spec(params["b_sq"].shape),
                  full_spec(params["w_vis"].shape),
                  full_spec(params["b_vis"].shape),
                  full_spec(params["w_sk"].shape),
                  full_spec(params["b_sk"].shape)],
        out_specs=(pl.BlockSpec((bt, Cv, Sv), lambda i: (i, 0, 0)),
                   pl.BlockSpec((bt, Cs, Ss), lambda i: (i, 0, 0)),
                   pl.BlockSpec((bt, Cv, 1), lambda i: (i, 0, 0)),
                   pl.BlockSpec((bt, Cs, 1), lambda i: (i, 0, 0))),
        compiler_params=pltpu.CompilerParams(
            dimension_semantics=("parallel",),
            vmem_limit_bytes=_VMEM_LIMIT_BYTES),
    )(vis3, sk3, params["w_sq_v"], params["w_sq_s"], params["b_sq"],
      params["w_vis"], params["b_vis"], params["w_sk"], params["b_sk"])

    return out_vis, out_sk, vgate[..., 0], sgate[..., 0]


# ----------------------------------------------------------------------------
# Fallback (very large per-sample activations): two tiled streaming passes.
# Blocks are (row_tile, FULL spatial extent) -> no lane padding, no accumulator.
# ----------------------------------------------------------------------------
def _pick_row_tile(rows, cols, itemsize, target_bytes):
    rt = (target_bytes // max(cols * itemsize, 1)) // 8 * 8
    rt = max(8, min(rt, _round_up(rows, 8)))
    if rows >= 16:  # keep >= 2 row blocks so both v7x TensorCores get work
        rt = min(rt, _round_up(_ceil_div(rows, 2), 8))
    return max(8, rt)


def _row_sum_kernel(x_ref, o_ref):
    o_ref[...] = jnp.sum(x_ref[...].astype(jnp.float32), axis=-1, keepdims=True)


def _rescale_kernel(x_ref, g_ref, o_ref):
    o_ref[...] = x_ref[...] * g_ref[...].astype(x_ref.dtype)


def _big_input_spec(rt, cols, grid_r):
    # Buffered(3) closes small per-step DMA bubbles when the grid is deep enough.
    if grid_r >= 3:
        return pl.BlockSpec((rt, cols), lambda i: (i, 0),
                            pipeline_mode=pl.Buffered(3))
    return pl.BlockSpec((rt, cols), lambda i: (i, 0))


def _row_mean_tiled(x2d):
    rows, cols = x2d.shape
    rt = _pick_row_tile(rows, cols, x2d.dtype.itemsize, _TILED_BLOCK_BYTES)
    grid_r = _ceil_div(rows, rt)
    sums = pl.pallas_call(
        _row_sum_kernel,
        out_shape=jax.ShapeDtypeStruct((grid_r * rt, 1), jnp.float32),
        grid=(grid_r,),
        in_specs=[_big_input_spec(rt, cols, grid_r)],
        out_specs=pl.BlockSpec((rt, 1), lambda i: (i, 0)),
        compiler_params=pltpu.CompilerParams(
            dimension_semantics=("parallel",),
            vmem_limit_bytes=_VMEM_LIMIT_BYTES),
    )(x2d)
    # only the tiny (rows, 1) column is sliced; the big slab is never padded/copied
    return sums[:rows] * (1.0 / cols)


def _rescale_tiled(x2d, gate_col):
    rows, cols = x2d.shape
    rt = _pick_row_tile(rows, cols, x2d.dtype.itemsize, _TILED_BLOCK_BYTES)
    grid_r = _ceil_div(rows, rt)
    return pl.pallas_call(
        _rescale_kernel,
        out_shape=jax.ShapeDtypeStruct((rows, cols), x2d.dtype),
        grid=(grid_r,),
        in_specs=[_big_input_spec(rt, cols, grid_r),
                  pl.BlockSpec((rt, 1), lambda i: (i, 0))],
        out_specs=pl.BlockSpec((rt, cols), lambda i: (i, 0)),
        compiler_params=pltpu.CompilerParams(
            dimension_semantics=("parallel",),
            vmem_limit_bytes=_VMEM_LIMIT_BYTES),
    )(x2d, gate_col.astype(jnp.float32))


# ----------------------------------------------------------------------------
# params / forward
# ----------------------------------------------------------------------------
def init_mmtm_params(key, dim_visual, dim_skeleton, ratio):
    """Deterministic nn.Linear-style init (uniform +-1/sqrt(fan_in))."""
    dim = dim_visual + dim_skeleton
    dim_out = int(2 * dim / ratio)
    ks = jax.random.split(key, 6)

    def linear(kw, kb, fan_in, fan_out):
        bound = fan_in ** -0.5
        w = jax.random.uniform(kw, (fan_in, fan_out), jnp.float32, -bound, bound)
        b = jax.random.uniform(kb, (1, fan_out), jnp.float32, -bound, bound)
        return w, b

    w_sq, b_sq = linear(ks[0], ks[1], dim, dim_out)
    w_vis, b_vis = linear(ks[2], ks[3], dim_out, dim_visual)
    w_sk, b_sk = linear(ks[4], ks[5], dim_out, dim_skeleton)
    return {
        "w_sq_v": w_sq[:dim_visual],      # (Cv, dim_out)
        "w_sq_s": w_sq[dim_visual:],      # (Cs, dim_out)
        "b_sq": b_sq,                     # (1, dim_out)
        "w_vis": w_vis, "b_vis": b_vis,   # (dim_out, Cv), (1, Cv)
        "w_sk": w_sk, "b_sk": b_sk,       # (dim_out, Cs), (1, Cs)
        # NOTE: reference module sizes BOTH running buffers with dim_visual and
        # updates BOTH with vis_gate.mean(0) — kept on purpose (quirk).
        "running_avg_weight_visual": jnp.zeros((dim_visual,), jnp.float32),
        "running_avg_weight_skeleton": jnp.zeros((dim_visual,), jnp.float32),
        "step": 0,
    }


def mmtm_forward(visual, skeleton, params, *, force_tiled=False):
    B, Cv = visual.shape[0], visual.shape[1]
    Cs = skeleton.shape[1]
    Sv = math.prod(visual.shape[2:]) if visual.ndim > 2 else 1
    Ss = math.prod(skeleton.shape[2:]) if skeleton.ndim > 2 else 1
    vis3 = visual.reshape(B, Cv, Sv)      # reshape of contiguous array: free
    sk3 = skeleton.reshape(B, Cs, Ss)

    per_b = (Cv * Sv + Cs * Ss) * visual.dtype.itemsize
    if (not force_tiled) and per_b <= _FUSED_STEP_SLAB_BYTES:
        # single fused kernel: read once, write once
        out_vis3, out_sk3, vis_gate, sk_gate = _fused_forward(vis3, sk3, params)
    else:
        # two streaming passes; tiny gate MLP done once in XLA in between
        vis2 = vis3.reshape(B * Cv, Sv)
        sk2 = sk3.reshape(B * Cs, Ss)
        mean_v = _row_mean_tiled(vis2).reshape(B, Cv)
        mean_s = _row_mean_tiled(sk2).reshape(B, Cs)
        exc = jnp.maximum(
            mean_v @ params["w_sq_v"] + mean_s @ params["w_sq_s"] + params["b_sq"],
            0.0)
        vis_gate = jax.nn.sigmoid(exc @ params["w_vis"] + params["b_vis"])
        sk_gate = jax.nn.sigmoid(exc @ params["w_sk"] + params["b_sk"])
        out_vis3 = _rescale_tiled(vis2, vis_gate.reshape(B * Cv, 1)
                                  ).reshape(B, Cv, Sv)
        out_sk3 = _rescale_tiled(sk2, sk_gate.reshape(B * Cs, 1)
                                 ).reshape(B, Cs, Ss)

    out_vis = out_vis3.reshape(visual.shape)
    out_sk = out_sk3.reshape(skeleton.shape)

    # stateful running-average bookkeeping (reference quirk: vis_gate for both)
    step = params["step"]
    new_ravg_vis = (vis_gate.mean(0)
                    + params["running_avg_weight_visual"] * step) / (step + 1)
    new_ravg_sk = (vis_gate.mean(0)
                   + params["running_avg_weight_skeleton"] * step) / (step + 1)
    new_state = {"running_avg_weight_visual": new_ravg_vis,
                 "running_avg_weight_skeleton": new_ravg_sk,
                 "step": step + 1}

    # matches (visual*vis_out, skeleton*sk_out, scales=None, squeeze_array=None)
    return out_vis, out_sk, None, None, new_state


# ----------------------------------------------------------------------------
# pure-JAX reference (for correctness spot-checks)
# ----------------------------------------------------------------------------
def _ref_forward(visual, skeleton, params):
    B, Cv = visual.shape[0], visual.shape[1]
    Cs = skeleton.shape[1]
    sq_v = visual.reshape(B, Cv, -1).mean(-1)
    sq_s = skeleton.reshape(B, Cs, -1).mean(-1)
    exc = jnp.maximum(
        sq_v @ params["w_sq_v"] + sq_s @ params["w_sq_s"] + params["b_sq"], 0.0)
    vg = jax.nn.sigmoid(exc @ params["w_vis"] + params["b_vis"])
    sg = jax.nn.sigmoid(exc @ params["w_sk"] + params["b_sk"])
    ov = visual * vg.reshape((B, Cv) + (1,) * (visual.ndim - 2))
    osk = skeleton * sg.reshape((B, Cs) + (1,) * (skeleton.ndim - 2))
    return ov, osk


if __name__ == "__main__":
    key = jax.random.PRNGKey(0)
    k_p, k_v1, k_s1, k_v2, k_s2 = jax.random.split(key, 5)

    dim_visual, dim_skeleton, ratio = 8, 8, 2
    B = 2
    params = init_mmtm_params(k_p, dim_visual, dim_skeleton, ratio)

    fwd = jax.jit(mmtm_forward, static_argnames=("force_tiled",))

    # --- fused single-kernel path (default for MMTM-sized activations) -------
    visual = jax.random.normal(k_v1, (B, dim_visual, 16, 16), jnp.float32)   # NCHW
    skeleton = jax.random.normal(k_s1, (B, dim_skeleton, 8, 16), jnp.float32)  # NCTV
    out_vis, out_sk, scales, squeeze_array, new_state = fwd(visual, skeleton, params)
    jax.block_until_ready((out_vis, out_sk,
                           new_state["running_avg_weight_visual"],
                           new_state["running_avg_weight_skeleton"]))
    assert out_vis.shape == visual.shape and out_sk.shape == skeleton.shape
    ref_vis, ref_sk = _ref_forward(visual, skeleton, params)
    assert bool(jnp.allclose(out_vis, ref_vis, atol=1e-4, rtol=1e-4))
    assert bool(jnp.allclose(out_sk, ref_sk, atol=1e-4, rtol=1e-4))

    # --- tiled two-pass fallback, forced; ragged spatial sizes (no padding) ---
    visual2 = jax.random.normal(k_v2, (B, dim_visual, 7, 7), jnp.float32)
    skeleton2 = jax.random.normal(k_s2, (B, dim_skeleton, 5, 9), jnp.float32)
    out_vis2, out_sk2, _, _, _ = fwd(visual2, skeleton2, params, force_tiled=True)
    jax.block_until_ready((out_vis2, out_sk2))
    ref_vis2, ref_sk2 = _ref_forward(visual2, skeleton2, params)
    assert bool(jnp.allclose(out_vis2, ref_vis2, atol=1e-4, rtol=1e-4))
    assert bool(jnp.allclose(out_sk2, ref_sk2, atol=1e-4, rtol=1e-4))

    print("KERNEL_OK")
</pallas_src>

<mosaic_0001>
module attributes {stable_mosaic.version = 11 : i64} {
  func.func @_fused_kernel(%arg0: i32, %arg1: memref<1x8x256xf32, #tpu.memory_space<vmem>>, %arg2: memref<1x8x128xf32, #tpu.memory_space<vmem>>, %arg3: memref<8x16xf32, #tpu.memory_space<vmem>>, %arg4: memref<8x16xf32, #tpu.memory_space<vmem>>, %arg5: memref<1x16xf32, #tpu.memory_space<vmem>>, %arg6: memref<16x8xf32, #tpu.memory_space<vmem>>, %arg7: memref<1x8xf32, #tpu.memory_space<vmem>>, %arg8: memref<16x8xf32, #tpu.memory_space<vmem>>, %arg9: memref<1x8xf32, #tpu.memory_space<vmem>>, %arg10: memref<1x8x256xf32, #tpu.memory_space<vmem>>, %arg11: memref<1x8x128xf32, #tpu.memory_space<vmem>>, %arg12: memref<1x8x1xf32, #tpu.memory_space<vmem>>, %arg13: memref<1x8x1xf32, #tpu.memory_space<vmem>>) attributes {dimension_semantics = [#tpu.dimension_semantics<parallel>], iteration_bounds = array<i64: 2>, scalar_prefetch = 0 : i64, scratch_operands = 0 : i64, tpu.core_type = #tpu.core_type<tc>, window_params = [{transform_indices = @transform_0, window_bounds = array<i64: 1, 8, 256>}, {transform_indices = @transform_1, window_bounds = array<i64: 1, 8, 128>}, {pipeline_mode = #tpu.pipeline_mode<synchronous>, transform_indices = @transform_2, window_bounds = array<i64: 8, 16>}, {pipeline_mode = #tpu.pipeline_mode<synchronous>, transform_indices = @transform_3, window_bounds = array<i64: 8, 16>}, {pipeline_mode = #tpu.pipeline_mode<synchronous>, transform_indices = @transform_4, window_bounds = array<i64: 1, 16>}, {pipeline_mode = #tpu.pipeline_mode<synchronous>, transform_indices = @transform_5, window_bounds = array<i64: 16, 8>}, {pipeline_mode = #tpu.pipeline_mode<synchronous>, transform_indices = @transform_6, window_bounds = array<i64: 1, 8>}, {pipeline_mode = #tpu.pipeline_mode<synchronous>, transform_indices = @transform_7, window_bounds = array<i64: 16, 8>}, {pipeline_mode = #tpu.pipeline_mode<synchronous>, transform_indices = @transform_8, window_bounds = array<i64: 1, 8>}, {transform_indices = @transform_9, window_bounds = array<i64: 1, 8, 256>}, {transform_indices = @transform_10, window_bounds = array<i64: 1, 8, 128>}, {transform_indices = @transform_11, window_bounds = array<i64: 1, 8, 1>}, {transform_indices = @transform_12, window_bounds = array<i64: 1, 8, 1>}]} {
    %c0 = arith.constant 0 : index
    %c0_0 = arith.constant 0 : index
    %c0_1 = arith.constant 0 : index
    %0 = vector.load %arg1[%c0, %c0_0, %c0_1] : memref<1x8x256xf32, #tpu.memory_space<vmem>>, vector<1x8x256xf32>
    %c0_2 = arith.constant 0 : index
    %c0_3 = arith.constant 0 : index
    %c0_4 = arith.constant 0 : index
    %1 = vector.load %arg2[%c0_2, %c0_3, %c0_4] : memref<1x8x128xf32, #tpu.memory_space<vmem>>, vector<1x8x128xf32>
    %cst = arith.constant dense<0.000000e+00> : vector<1x8xf32>
    %2 = vector.multi_reduction <add>, %0, %cst [2] : vector<1x8x256xf32> to vector<1x8xf32>
    %cst_5 = arith.constant 3.906250e-03 : f32
    %3 = vector.broadcast %cst_5 : f32 to vector<1x8xf32>
    %4 = arith.mulf %2, %3 : vector<1x8xf32>
    %cst_6 = arith.constant dense<0.000000e+00> : vector<1x8xf32>
    %5 = vector.multi_reduction <add>, %1, %cst_6 [2] : vector<1x8x128xf32> to vector<1x8xf32>
    %cst_7 = arith.constant 7.812500e-03 : f32
    %6 = vector.broadcast %cst_7 : f32 to vector<1x8xf32>
    %7 = arith.mulf %5, %6 : vector<1x8xf32>
    %c0_8 = arith.constant 0 : index
    %c0_9 = arith.constant 0 : index
    %8 = vector.load %arg3[%c0_8, %c0_9] : memref<8x16xf32, #tpu.memory_space<vmem>>, vector<8x16xf32>
    %cst_10 = arith.constant dense<0.000000e+00> : vector<1x16xf32>
    %9 = tpu.matmul %4, %8, %cst_10 {dimension_numbers = #tpu.dot_dimension_numbers<[1], [0], [0], [1], [0, 0, 1, 1], [], []>} : vector<1x8xf32>, vector<8x16xf32>, vector<1x16xf32> -> vector<1x16xf32>
    %c0_11 = arith.constant 0 : index
    %c0_12 = arith.constant 0 : index
    %10 = vector.load %arg4[%c0_11, %c0_12] : memref<8x16xf32, #tpu.memory_space<vmem>>, vector<8x16xf32>
    %cst_13 = arith.constant dense<0.000000e+00> : vector<1x16xf32>
    %11 = tpu.matmul %7, %10, %cst_13 {dimension_numbers = #tpu.dot_dimension_numbers<[1], [0], [0], [1], [0, 0, 1, 1], [], []>} : vector<1x8xf32>, vector<8x16xf32>, vector<1x16xf32> -> vector<1x16xf32>
    %12 = arith.addf %9, %11 : vector<1x16xf32>
    %c0_14 = arith.constant 0 : index
    %c0_15 = arith.constant 0 : index
    %13 = vector.load %arg5[%c0_14, %c0_15] : memref<1x16xf32, #tpu.memory_space<vmem>>, vector<1x16xf32>
    %14 = arith.addf %12, %13 : vector<1x16xf32>
    %cst_16 = arith.constant 0.000000e+00 : f32
    %15 = vector.broadcast %cst_16 : f32 to vector<1x16xf32>
    %16 = arith.maximumf %14, %15 : vector<1x16xf32>
    %c0_17 = arith.constant 0 : index
    %c0_18 = arith.constant 0 : index
    %17 = vector.load %arg6[%c0_17, %c0_18] : memref<16x8xf32, #tpu.memory_space<vmem>>, vector<16x8xf32>
    %cst_19 = arith.constant dense<0.000000e+00> : vector<1x8xf32>
    %18 = tpu.matmul %16, %17, %cst_19 {dimension_numbers = #tpu.dot_dimension_numbers<[1], [0], [0], [1], [0, 0, 1, 1], [], []>} : vector<1x16xf32>, vector<16x8xf32>, vector<1x8xf32> -> vector<1x8xf32>
    %c0_20 = arith.constant 0 : index
    %c0_21 = arith.constant 0 : index
    %19 = vector.load %arg7[%c0_20, %c0_21] : memref<1x8xf32, #tpu.memory_space<vmem>>, vector<1x8xf32>
    %20 = arith.addf %18, %19 : vector<1x8xf32>
    %c0_22 = arith.constant 0 : index
    %c0_23 = arith.constant 0 : index
    %21 = vector.load %arg8[%c0_22, %c0_23] : memref<16x8xf32, #tpu.memory_space<vmem>>, vector<16x8xf32>
    %cst_24 = arith.constant dense<0.000000e+00> : vector<1x8xf32>
    %22 = tpu.matmul %16, %21, %cst_24 {dimension_numbers = #tpu.dot_dimension_numbers<[1], [0], [0], [1], [0, 0, 1, 1], [], []>} : vector<1x16xf32>, vector<16x8xf32>, vector<1x8xf32> -> vector<1x8xf32>
    %c0_25 = arith.constant 0 : index
    %c0_26 = arith.constant 0 : index
    %23 = vector.load %arg9[%c0_25, %c0_26] : memref<1x8xf32, #tpu.memory_space<vmem>>, vector<1x8xf32>
    %24 = arith.addf %22, %23 : vector<1x8xf32>
    %cst_27 = arith.constant 0.000000e+00 : f32
    %25 = vector.broadcast %cst_27 : f32 to vector<1x8xf32>
    %26 = arith.subf %25, %20 : vector<1x8xf32>
    %27 = math.exp %26 : vector<1x8xf32>
    %cst_28 = arith.constant 1.000000e+00 : f32
    %28 = vector.broadcast %cst_28 : f32 to vector<1x8xf32>
    %29 = arith.addf %28, %27 : vector<1x8xf32>
    %cst_29 = arith.constant 1.000000e+00 : f32
    %30 = vector.broadcast %cst_29 : f32 to vector<1x8xf32>
    %31 = arith.divf %30, %29 : vector<1x8xf32>
    %cst_30 = arith.constant 0.000000e+00 : f32
    %32 = vector.broadcast %cst_30 : f32 to vector<1x8xf32>
    %33 = arith.subf %32, %24 : vector<1x8xf32>
    %34 = math.exp %33 : vector<1x8xf32>
    %cst_31 = arith.constant 1.000000e+00 : f32
    %35 = vector.broadcast %cst_31 : f32 to vector<1x8xf32>
    %36 = arith.addf %35, %34 : vector<1x8xf32>
    %cst_32 = arith.constant 1.000000e+00 : f32
    %37 = vector.broadcast %cst_32 : f32 to vector<1x8xf32>
    %38 = arith.divf %37, %36 : vector<1x8xf32>
    %39 = vector.shape_cast %31 : vector<1x8xf32> to vector<1x8x1xf32>
    %c0_33 = arith.constant 0 : index
    %c0_34 = arith.constant 0 : index
    %c0_35 = arith.constant 0 : index
    %40 = vector.load %arg12[%c0_33, %c0_34, %c0_35] : memref<1x8x1xf32, #tpu.memory_space<vmem>>, vector<1x8x1xf32>
    tpu.vector_store %arg12[%c0_33, %c0_34, %c0_35], %39 {strides = array<i32>} : memref<1x8x1xf32, #tpu.memory_space<vmem>>, vector<1x8x1xf32>,
    %41 = vector.shape_cast %38 : vector<1x8xf32> to vector<1x8x1xf32>
    %c0_36 = arith.constant 0 : index
    %c0_37 = arith.constant 0 : index
    %c0_38 = arith.constant 0 : index
    %42 = vector.load %arg13[%c0_36, %c0_37, %c0_38] : memref<1x8x1xf32, #tpu.memory_space<vmem>>, vector<1x8x1xf32>
    tpu.vector_store %arg13[%c0_36, %c0_37, %c0_38], %41 {strides = array<i32>} : memref<1x8x1xf32, #tpu.memory_space<vmem>>, vector<1x8x1xf32>,
    %43 = vector.shape_cast %31 : vector<1x8xf32> to vector<1x8x1xf32>
    %44 = vector.broadcast %43 : vector<1x8x1xf32> to vector<1x8x256xf32>
    %45 = arith.mulf %0, %44 : vector<1x8x256xf32>
    %c0_39 = arith.constant 0 : index
    %c0_40 = arith.constant 0 : index
    %c0_41 = arith.constant 0 : index
    %46 = vector.load %arg10[%c0_39, %c0_40, %c0_41] : memref<1x8x256xf32, #tpu.memory_space<vmem>>, vector<1x8x256xf32>
    tpu.vector_store %arg10[%c0_39, %c0_40, %c0_41], %45 {strides = array<i32>} : memref<1x8x256xf32, #tpu.memory_space<vmem>>, vector<1x8x256xf32>,
    %47 = vector.shape_cast %38 : vector<1x8xf32> to vector<1x8x1xf32>
    %48 = vector.broadcast %47 : vector<1x8x1xf32> to vector<1x8x128xf32>
    %49 = arith.mulf %1, %48 : vector<1x8x128xf32>
    %c0_42 = arith.constant 0 : index
    %c0_43 = arith.constant 0 : index
    %c0_44 = arith.constant 0 : index
    %50 = vector.load %arg11[%c0_42, %c0_43, %c0_44] : memref<1x8x128xf32, #tpu.memory_space<vmem>>, vector<1x8x128xf32>
    tpu.vector_store %arg11[%c0_42, %c0_43, %c0_44], %49 {strides = array<i32>} : memref<1x8x128xf32, #tpu.memory_space<vmem>>, vector<1x8x128xf32>,
    return
  }
  func.func @transform_0(%arg0: i32) -> (i32, i32, i32) {
    %c0_i32 = arith.constant 0 : i32
    %c0_i32_0 = arith.constant 0 : i32
    %c0_i32_1 = arith.constant 0 : i32
    return %arg0, %c0_i32, %c0_i32_0 : i32, i32, i32
  }
  func.func @transform_1(%arg0: i32) -> (i32, i32, i32) {
    %c0_i32 = arith.constant 0 : i32
    %c0_i32_0 = arith.constant 0 : i32
    %c0_i32_1 = arith.constant 0 : i32
    return %arg0, %c0_i32, %c0_i32_0 : i32, i32, i32
  }
  func.func @transform_2(%arg0: i32) -> (i32, i32) {
    %c0_i32 = arith.constant 0 : i32
    %c0_i32_0 = arith.constant 0 : i32
    %c0_i32_1 = arith.constant 0 : i32
    return %c0_i32, %c0_i32_0 : i32, i32
  }
  func.func @transform_3(%arg0: i32) -> (i32, i32) {
    %c0_i32 = arith.constant 0 : i32
    %c0_i32_0 = arith.constant 0 : i32
    %c0_i32_1 = arith.constant 0 : i32
    return %c0_i32, %c0_i32_0 : i32, i32
  }
  func.func @transform_4(%arg0: i32) -> (i32, i32) {
    %c0_i32 = arith.constant 0 : i32
    %c0_i32_0 = arith.constant 0 : i32
    %c0_i32_1 = arith.constant 0 : i32
    return %c0_i32, %c0_i32_0 : i32, i32
  }
  func.func @transform_5(%arg0: i32) -> (i32, i32) {
    %c0_i32 = arith.constant 0 : i32
    %c0_i32_0 = arith.constant 0 : i32
    %c0_i32_1 = arith.constant 0 : i32
    return %c0_i32, %c0_i32_0 : i32, i32
  }
  func.func @transform_6(%arg0: i32) -> (i32, i32) {
    %c0_i32 = arith.constant 0 : i32
    %c0_i32_0 = arith.constant 0 : i32
    %c0_i32_1 = arith.constant 0 : i32
    return %c0_i32, %c0_i32_0 : i32, i32
  }
  func.func @transform_7(%arg0: i32) -> (i32, i32) {
    %c0_i32 = arith.constant 0 : i32
    %c0_i32_0 = arith.constant 0 : i32
    %c0_i32_1 = arith.constant 0 : i32
    return %c0_i32, %c0_i32_0 : i32, i32
  }
  func.func @transform_8(%arg0: i32) -> (i32, i32) {
    %c0_i32 = arith.constant 0 : i32
    %c0_i32_0 = arith.constant 0 : i32
    %c0_i32_1 = arith.constant 0 : i32
    return %c0_i32, %c0_i32_0 : i32, i32
  }
  func.func @transform_9(%arg0: i32) -> (i32, i32, i32) {
    %c0_i32 = arith.constant 0 : i32
    %c0_i32_0 = arith.constant 0 : i32
    %c0_i32_1 = arith.constant 0 : i32
    return %arg0, %c0_i32, %c0_i32_0 : i32, i32, i32
  }
  func.func @transform_10(%arg0: i32) -> (i32, i32, i32) {
    %c0_i32 = arith.constant 0 : i32
    %c0_i32_0 = arith.constant 0 : i32
    %c0_i32_1 = arith.constant 0 : i32
    return %arg0, %c0_i32, %c0_i32_0 : i32, i32, i32
  }
  func.func @transform_11(%arg0: i32) -> (i32, i32, i32) {
    %c0_i32 = arith.constant 0 : i32
    %c0_i32_0 = arith.constant 0 : i32
    %c0_i32_1 = arith.constant 0 : i32
    return %arg0, %c0_i32, %c0_i32_0 : i32, i32, i32
  }
  func.func @transform_12(%arg0: i32) -> (i32, i32, i32) {
    %c0_i32 = arith.constant 0 : i32
    %c0_i32_0 = arith.constant 0 : i32
    %c0_i32_1 = arith.constant 0 : i32
    return %arg0, %c0_i32, %c0_i32_0 : i32, i32, i32
  }
}

</mosaic_0001>

<bundles_post_ra>
// kernel: mmtm_forward.1
= control target key start
LH: loop header
LB: loop body
LE: loop exit
PB: predicated region body
PF: predicated region fallthrough
CT: control target
= control target key end

     0   :  { %s1417_s0 = inlined_call_operand.vmem [shape: f32[2,8,256], index: 0, kind: input, shape index: {}]   ;;  %s1418_s1 = inlined_call_operand.vmem [shape: f32[2,8,128], index: 1, kind: input, shape index: {}]   ;;  %s1419_s2 = inlined_call_operand.vmem [shape: f32[8,16], index: 2, kind: input, shape index: {}]   ;;  %s1420_s3 = inlined_call_operand.vmem [shape: f32[8,16], index: 3, kind: input, shape index: {}]   ;;  %s1421_s4 = inlined_call_operand.vmem [shape: f32[1,16], index: 4, kind: input, shape index: {}]   ;;  %s1422_s5 = inlined_call_operand.vmem [shape: f32[16,8], index: 5, kind: input, shape index: {}]   ;;  %s1423_s6 = inlined_call_operand.vmem [shape: f32[1,8], index: 6, kind: input, shape index: {}]   ;;  %s1424_s7 = inlined_call_operand.vmem [shape: f32[16,8], index: 7, kind: input, shape index: {}]   ;;  %s1425_s8 = inlined_call_operand.vmem [shape: f32[1,8], index: 8, kind: input, shape index: {}]   ;;  %s1426_s9 = inlined_call_operand.vmem [shape: f32[2,8,256], index: 9, kind: output, shape index: {0}]   ;;  %s1427_s10 = inlined_call_operand.vmem [shape: f32[2,8,128], index: 10, kind: output, shape index: {1}]   ;;  %s1428_s11 = inlined_call_operand.vmem [shape: f32[2,8,1], index: 11, kind: output, shape index: {2}]   ;;  %s1429_s12 = inlined_call_operand.hbm [shape: f32[2,8,1], index: 12, kind: output, shape index: {3}]  }
   0x1   :  { %1431 = sst [smem:[#allocation5_spill]] %s1417_s0 }
   0x2   :  { %1432 = sst [smem:[#allocation6_spill]] %s1418_s1 }
   0x3   :  { %1433 = sst [smem:[#allocation7_spill]] %s1419_s2 }
   0x4   :  { %1434 = sst [smem:[#allocation8_spill]] %s1420_s3 }
   0x5   :  { %1435 = sst [smem:[#allocation9_spill]] %s1421_s4 }
   0x6   :  { %18 = vsyncpa [#allocation3], 0 }
   0x7   :  { %20 = vsyncpa [#allocation3 + $0x1], 0  ;;  %s1244_s21 = smov 0   ;;  %s1246_s22 = smov 0  }
   0x8   :  { %s1248_s23 = smov 0   ;;  %s1250_s24 = smov 0  }
   0x9 LB: > { %s1265_s25 = sadd.s32 4294967295, %s1173_s24   ;;  %s999_s26 = sadd.s32 4294967294, %s1173_s24   ;;  %s1173_s24 = sphi %s1250_s24, %s1447_s24   ;;  %s1169_s23 = sphi %s1248_s23, %s1446_s23   ;;  %s1165_s22 = sphi %s1246_s22, %s1445_s22   ;;  %s1161_s21 = sphi %s1244_s21, %s1444_s21  }
   0xa   : > { %s1269_s27 = sadd.s32 1, %s1173_s24   ;;  %s310_s28 = sadd.s32 1, %s1169_s23 }
   0xb   : > { %s307_s29 = ssub.s32 %s1173_s24, %s1269_s27  ;;  %p320_p0 = scmp.ne.s32.totalorder %s1169_s23, %s1165_s22 }
   0xc   : > { %p308_p1 = scmp.eq.s32.totalorder %s307_s29, 0  ;;  %p321_p2 = scmp.eq.s32.totalorder %s1265_s25, 1 }
   0xd   : > { %p326_p3 = scmp.ne.s32.totalorder %s1165_s22, %s1161_s21  ;;  %p327_p4 = scmp.eq.s32.totalorder %s999_s26, 1 }
   0xe   : > { %s1280_s30 = scalar_select %p308_p1, %s1169_s23, %s310_s28  }
   0xf   : > { %p1282_p5 = por %p321_p2, %p320_p0  ;;  %p1286_p6 = por %p327_p4, %p326_p3 }
  0x10   : > { %p1002_p7 = scmp.ge.s32.totalorder %s1173_s24, 1  ;;  %p381_p8 = scmp.lt.s32.totalorder %s1173_s24, 3 }
  0x12   : > { %p382_p9 = pnand %p1002_p7, %p381_p8 }
  0x13   : > { %p440_p10 = scmp.lt.s32.totalorder (!%p382_p9), %s1265_s25, 1  ;;  %s1438_s0 = sld [smem:[#allocation5_spill]] (!%p382_p9)  ;;  %v1175_v4 = vmov (!%p382_p9), 0.0   ;;  %vm1176_vm0 = vmmov (!%p382_p9), 0   ;;  %v475_v7 = vlaneseq (!%p382_p9)  ;;  %vm481_vm1 = vcmask (!%p382_p9), 64512   ;;  %v634_v17 = vld [vmem:[%s1422_s5] sm:$0xff] (!%p382_p9) }
  0x14   : > { %385 = sbr.rel (%p382_p9) target bundleno = 785 (0x311), region = 56  ;;  %s1439_s1 = sld [smem:[#allocation6_spill]] (!%p382_p9)  ;;  %1036 = vmatprep.subr.mxu1 (!%p382_p9), %v1175_v4  ;;  %1031 = vmatprep.subr.mxu0 (!%p382_p9), %v1175_v4  ;;  %v635_v18 = vld [vmem:[%s1422_s5 + $0x8] sm:$0xff] (!%p382_p9)  ;;  %v711_v20 = vld [vmem:[%s1424_s7] sm:$0xff] (!%p382_p9)  ;;  %v1177_v22 = vmov (!%p382_p9), 0.0|0.0   ;;  %vm637_vm2 = vcmask (!%p382_p9), 130048  }
  0x15   : > { %s1440_s2 = sld [smem:[#allocation7_spill]] (!%p382_p9)  ;;  %1038 = vmatprep.mubr.msk.f32.mxu1 (!%p382_p9), %vm1176_vm0, %v1175_v4  ;;  %1033 = vmatprep.mubr.msk.f32.mxu0 (!%p382_p9), %vm1176_vm0, %v1175_v4  ;;  %s1441_s3 = sld [smem:[#allocation8_spill]] (!%p382_p9)  ;;  %v476_v8 = vand.u32 (!%p382_p9), 127, %v475_v7  ;;  %v478_v9 = vshrl.u32 (!%p382_p9), %v475_v7, 7  ;;  %v1056_v19 = vpack.c.bf16 (!%p382_p9), %v635_v18, %v634_v17  ;;  %v712_v21 = vld [vmem:[%s1424_s7 + $0x8] sm:$0xff] (!%p382_p9)  ;;  %vm803_vm3 = vcmask (!%p382_p9), 7168  }
  0x16   : > { %v1059_v23 = vpack.c.bf16 (!%p382_p9), %v712_v21, %v711_v20  ;;  %s1442_s4 = sld [smem:[#allocation9_spill]] (!%p382_p9)  ;;  %v636_v32 = vld [vmem:[%s1423_s6] sm:$0x1] (!%p382_p9) }
  0x17   : > { %v479_v10 = vsub.s32 (!%p382_p9), %v476_v8, %v478_v9  ;;  %v713_v33 = vld [vmem:[%s1425_s8] sm:$0x1] (!%p382_p9)  ;;  %v798_v48 = vsub.s32 (!%p382_p9), 0, %v478_v9 }
  0x1b   : > { %s1294_s15 = scalar_select %p440_p10, %s1265_s25, 1  ;;  %v472_v5 = vld [vmem:[%s1440_s2] sm:$0xff] }
  0x1c   : > { %1037 = vmatpush3.msra.mxu1 %v472_v5  ;;  %v473_v6 = vld [vmem:[%s1441_s3] sm:$0xff]  ;;  %s1016_s2 = sshll.u32 %s1265_s25, 7 }
  0x1d   : > { %s1430_s16 = sshll.u32 %s1294_s15, 4  ;;  %s1298_s17 = sshll.u32 %s1294_s15, 3  ;;  %1032 = vmatpush3.msra.mxu0 %v473_v6  ;;  %1058 = vmatprep.subr.bf16.mxu1 %v1177_v22  ;;  %v631_v27 = vld [vmem:[%s1442_s4] sm:$0x1] }
  0x1e   : > { %s444_s20 = scalar_lea.vmem %s1438_s0, %s1430_s16  ;;  %s448_s29 = scalar_lea.vmem %s1439_s1, %s1298_s17  ;;  %1055 = vmatprep.subr.bf16.mxu0 %v1177_v22 }
  0x1f   : > { %v1305_v0 = vld [vmem:[%s444_s20] sm:$0xff]  ;;  %v1307_v1 = vld [vmem:[%s444_s20 + $0x8] sm:$0xff]  ;;  %s437_s20 = sand.u32 1, %s1165_s22   ;;  %s461_s0 = scalar_lea.vmem %s1428_s11, %s1298_s17 }
  0x20   : > { %v465_v2 = vadd.f32 %v1307_v1, %v1305_v0  ;;  %v1315_v3 = vld [vmem:[%s448_s29] sm:$0xff]  ;;  %s1003_s26 = sshll.u32 %s437_s20, 3  ;;  %s1443_s16 = sshll.u32 %s1294_s15, 4 }
  0x21   : > { %s453_s1 = scalar_lea.vmem %s1426_s9, %s1443_s16  ;;  %s439_s3 = scalar_lea.vmem [#allocation2], %s1003_s26 }
  0x22   : > { %466 = vadd.xlane.f32.xlu0 %v465_v2  ;;  %s855_s4 = sshll.u32 %s439_s3, 4  ;;  %s1365_s15 = scalar_lea.hbm %s1429_s12, %s1016_s2  ;;  %s1367_s4 = int_to_ptr.vmem [resolvable:$true] %s855_s4 }
  0x23   : > { %s457_s25 = scalar_lea.vmem %s1427_s10, %s1298_s17  ;;  %s833_s26 = scalar_lea.sflag [#allocation3], %s437_s20 }
  0x24   : > { %s1178_s2 = smov [#allocation2]  }
  0x26   : > { %469 = vadd.xlane.f32.xlu0 %v1315_v3 }
  0xaf   : > { %v467_v11 = vpop.xlane.xlu0 %466 }
  0xb0   : > { %v468_v12 = vmul.f32 0.00390625, %v467_v11 }
  0xb2   : > { %v558_v13 = vrot.slane %v468_v12, %v479_v10 }
  0xb3   : > { %v470_v14 = vpop.xlane.xlu0 %469 }
  0xb4   : > { %v471_v15 = vmul.f32 0.0078125, %v470_v14  ;;  %1039 = vmatmul.mubr.msk.f32.vlgmr.msra.gmra.mrb[0].mxu1 %vm481_vm1, %v558_v13 }
  0xb5   : > { %1052 = vmatprep.mubr.msk.f32.mxu1 %vm1176_vm0, %v1175_v4  ;;  %1060 = vmatpush3.bf16.msra.mxu1 %v1059_v23 }
  0xb6   : > { %v480_v16 = vrot.slane %v471_v15, %v479_v10 }
  0xb8   : > { %1034 = vmatmul.mubr.msk.f32.vlgmr.msra.gmra.mrb[0].mxu0 %vm481_vm1, %v480_v16 }
  0xb9   : > { %1045 = vmatprep.mubr.msk.f32.mxu0 %vm1176_vm0, %v1175_v4  ;;  %1057 = vmatpush3.bf16.msra.mxu0 %v1056_v19 }
 0x187   : > { %v627_v24 = vpop.f32.mrb[0].mxu1 }
 0x188   : > { %v1040_v25 = vpop.f32.mrb[1].mxu1 }
 0x18b   : > { %v550_v26 = vpop.f32.mrb[0].mxu0 }
 0x18c   : > { %v628_v28 = vadd.f32 %v627_v24, %v550_v26  ;;  %v1035_v29 = vpop.f32.mrb[1].mxu0 }
 0x18e   : > { %v632_v30 = vadd.f32 %v631_v27, %v628_v28 }
 0x190   : > { %v633_v31 = vmax.f32 %v632_v30, 0.0 }
 0x192   : > { %1046 = vmatmul.mubr.msk.f32.vlgmr.msra.gmra.mrb[2].mxu0 %vm637_vm2, %v633_v31  ;;  %1053 = vmatmul.mubr.msk.f32.vlgmr.msra.gmra.mrb[2].mxu1 %vm637_vm2, %v633_v31 }
 0x265   : > { %v707_v34 = vpop.f32.mrb[2].mxu0  ;;  %v780_v35 = vpop.f32.mrb[2].mxu1 }
 0x266   : > { %v708_v36 = vadd.f32 %v707_v34, %v636_v32  ;;  %v781_v37 = vadd.f32 %v780_v35, %v713_v33  ;;  %v1047_v38 = vpop.f32.mrb[3].mxu0  ;;  %v1054_v39 = vpop.f32.mrb[3].mxu1 }
 0x268   : > { %v784_v40 = vsub.f32 0.0, %v708_v36  ;;  %v790_v41 = vsub.f32 0.0, %v781_v37 }
 0x26a   : > { %v785_v42 = vmul.f32 1.442695, %v784_v40  ;;  %v791_v43 = vmul.f32 1.442695, %v790_v41 }
 0x26c   : > { %1103 = vpow2.f32 %v785_v42 }
 0x26d   : > { %1105 = vpow2.f32 %v791_v43 }
 0x276   : > { %v1104_v44 = vpop.eup %1103 }
 0x277   : > { %v1106_v45 = vpop.eup %1105  ;;  %v787_v46 = vadd.f32 1.0, %v1104_v44 }
 0x278   : > { %v793_v47 = vadd.f32 1.0, %v1106_v45 }
 0x279   : > { %1107 = vrcp.f32 %v787_v46 }
 0x27a   : > { %1109 = vrcp.f32 %v793_v47 }
 0x283   : > { %v1108_v49 = vpop.eup %1107 }
 0x284   : > { %v799_v50 = vrot.slane %v1108_v49, %v798_v48  ;;  %v1110_v51 = vpop.eup %1109 }
 0x285   : > { %v808_v52 = vrot.slane %v1110_v51, %v798_v48 }
 0x286   : > { %801 = vbcast.lane.b32.xlu1 %v799_v50, 256 }
 0x28a   : > { %810 = vbcast.lane.b32.xlu1 %v808_v52, 256 }
 0x2f8   : > { %v802_v53 = vpop.permute.xlu1 %801 }
 0x2f9   : > { %804 = vst.msk [vmem:[%s461_s0] sm:$0xff] %vm803_vm3, %v802_v53  ;;  %v813_v54 = vmul.f32 %v802_v53, %v1305_v0  ;;  %v814_v55 = vmul.f32 %v802_v53, %v1307_v1  ;;  %s1115_s0 = sshll.u32 %s1178_s2, 4  ;;  %s1116_s0 = int_to_ptr.vmem [resolvable:$false] %s1115_s0 }
 0x2fa   : > { %s1117_s19 = scalar_lea.vmem %s1116_s0, 256  ;;  %p1118_p0 = scmp.lt.s32.totalorder %s1367_s4, %s1116_s0 }
 0x2fb   : > { %815 = vst [vmem:[%s453_s1] sm:$0xff] %v813_v54  ;;  %816 = vst [vmem:[%s453_s1 + $0x8] sm:$0xff] %v814_v55  ;;  %s1111_s1 = scalar_lea.vmem %s1367_s4, 128 }
 0x2fc   : > { %v811_v56 = vpop.permute.xlu1 %810  ;;  %p1112_p11 = scmp.ne.s32.totalorder %s1367_s4, %s1111_s1  ;;  %p1119_p1 = scmp.lt.s32.totalorder %s1117_s19, %s1111_s1 }
 0x2fd   : > { %812 = vst.msk [vmem:[%s439_s3] sm:$0xff] %vm803_vm3, %v811_v56  ;;  %v817_v57 = vmul.f32 %v811_v56, %v1315_v3 }
 0x2fe   : > { %p1113_p12 = pnand %p1112_p11, %p1282_p5  ;;  %p1120_p2 = por %p1119_p1, %p1118_p0 }
 0x300   : > { %p1114_p13 = pneg %p1113_p12 }
 0x302   : > { %p1121_p3 = pnand %p1120_p2, %p1114_p13 }
 0x304   : > { %1124 = shalt.err (!%p1121_p3)
}
 0x305   : > { %s1125_s3 = scalar_lea.hbm %s1365_s15, 128  ;;  %s1129_s29 = scalar_lea.hbm %s1429_s12, 256 }
 0x306   : > { %p1126_p4 = scmp.ne.s32.totalorder %s1365_s15, %s1125_s3  ;;  %p1130_p9 = scmp.lt.u32.totalorder %s1365_s15, %s1429_s12 }
 0x307   : > { %p1131_p10 = scmp.lt.u32.totalorder %s1129_s29, %s1125_s3  ;;  %p1133_p12 = scmp.lt.u32.totalorder %s1125_s3, %s1365_s15 }
 0x308   : > { %p1127_p7 = pnand %p1126_p4, %p1282_p5 }
 0x309   : > { %p1132_p11 = por %p1131_p10, %p1130_p9 }
 0x30a   : > { %p1128_p8 = pneg %p1127_p7 }
 0x30b   : > { %p1134_p13 = por %p1133_p12, %p1132_p11 }
 0x30d   : > { %p1135_p0 = pnand %p1134_p13, %p1128_p8 }
 0x30f   : > { %1138 = shalt.err (!%p1135_p0)
}
 0x310   : > { %1061 = dma.vmem_to_hbm [thread:$0]  (%p1282_p5), %s1367_s4, 128, %s1365_s15, %s833_s26   ;;  %818 = vst [vmem:[%s457_s25] sm:$0xff] %v817_v57 }
 0x311 PF: > { %p1067_p1 = scmp.ge.s32.totalorder %s1173_s24, 2  ;;  %s889_s0 = sand.u32 1, %s1161_s21  }
 0x312   : > { %s890_s19 = scalar_lea.sflag [#allocation3], %s889_s0 }
 0x313   : > { %p1064_p2 = pnand %p1067_p1, %p1286_p6 }
 0x315   : > { %1156 = dma.done.wait (!%p1064_p2), %s890_s19, 128  }
 0x316   : > { %1158 = vsyncadd (!%p1064_p2), %s890_s19, 4294967168  ;;  %p23_p5 = scmp.ge.s32.totalorder %s1269_s27, 4   ;;  %s1444_s21 = smov %s1165_s22 }
 0x317   : > { %s1445_s22 = smov %s1169_s23  ;;  %s1446_s23 = smov %s1280_s30 }
 0x318   : > { %s1447_s24 = smov %s1269_s27  ;;  %25 = sbr.rel (!%p23_p5) target bundleno = 9 (0x9), region = 130 }
 0x31f   :  { %895 = vsyncpa [#allocation3], 1 }
 0x320   :  { %897 = vsyncpa [#allocation3 + $0x1], 1 }

</bundles_post_ra>
